<compile_context>
chip_gen: v7x
topology: tpu7x:2x2x1
jax: 0.10.0
libtpu: 0.0.40
codegen_flags: <defaults>
</compile_context>

<pallas_src>
import math

import jax
import jax.numpy as jnp
from jax.experimental import pallas as pl
from jax.experimental.pallas import tpu as pltpu


# ---------------------------------------------------------------------------
# Tiling / VMEM helpers
# ---------------------------------------------------------------------------

def _pick_row_tile(n: int, preferred: int = 256) -> int:
    """Largest divisor of n that is <= preferred and a multiple of 8 (else n itself)."""
    for cand in (preferred, 512, 256, 128, 64, 32, 16, 8):
        if cand <= preferred and n % cand == 0:
            return cand
    return n


def _pick_col_tile(n: int, preferred: int = 512) -> int:
    """Lane-dim (last-dim) block sizes must be multiples of 128 or the full extent."""
    for cand in (preferred, 512, 256, 128):
        if cand <= preferred and n % cand == 0:
            return cand
    return n


def _vmem_limit(buffer_bytes: int) -> int:
    """Derive vmem_limit_bytes from the actual buffer footprint instead of a constant
    (a fixed 48 MiB leaves almost no headroom on v7x's 64 MiB VMEM)."""
    try:
        cap = pltpu.get_tpu_info().vmem_capacity_bytes
    except Exception:
        cap = 64 * 1024 * 1024          # conservative fallback: v7x per-core VMEM
    want = int(buffer_bytes * 1.5) + (4 << 20)   # pipeline + compiler-internal headroom
    return int(max(16 << 20, min(want, int(cap * 0.9))))


# ---------------------------------------------------------------------------
# Row/column-tiled linear kernel:  y = x @ W + b  (W pre-transposed to (in, out))
# ---------------------------------------------------------------------------

def _linear_kernel(x_ref, w_ref, b_ref, o_ref):
    o_ref[...] = (jnp.dot(x_ref[...], w_ref[...], preferred_element_type=jnp.float32)
                  + b_ref[...]).astype(o_ref.dtype)


def _linear(x2d, w_t, b2d, out_dtype):
    """x2d: (R, Cin) bf16, w_t: (Cin, Cout) bf16, b2d: (1, Cout) f32 -> (R, Cout)."""
    R, Cin = x2d.shape
    _, Cout = w_t.shape
    tr = _pick_row_tile(R)
    tc = _pick_col_tile(Cout)
    nr, nc = R // tr, Cout // tc

    in_itemsize = jnp.dtype(x2d.dtype).itemsize
    out_itemsize = jnp.dtype(out_dtype).itemsize
    buffer_bytes = 2 * (tr * Cin * in_itemsize          # x block
                        + Cin * tc * in_itemsize        # weight block
                        + tc * 4                        # bias block (f32)
                        + tr * tc * out_itemsize)       # output block

    grid_spec = pltpu.PrefetchScalarGridSpec(
        num_scalar_prefetch=0,
        grid=(nr, nc),
        in_specs=[pl.BlockSpec((tr, Cin), lambda i, j: (i, 0)),
                  pl.BlockSpec((Cin, tc), lambda i, j: (0, j)),
                  pl.BlockSpec((1, tc), lambda i, j: (0, j))],
        out_specs=pl.BlockSpec((tr, tc), lambda i, j: (i, j)),
    )
    return pl.pallas_call(
        _linear_kernel,
        out_shape=jax.ShapeDtypeStruct((R, Cout), out_dtype),
        grid_spec=grid_spec,
        compiler_params=pltpu.CompilerParams(
            dimension_semantics=("parallel", "parallel"),
            vmem_limit_bytes=_vmem_limit(buffer_bytes),
        ),
    )(x2d, w_t, b2d)


# ---------------------------------------------------------------------------
# Flash-attention kernel (online softmax, heads batched, no weights in VMEM)
# ---------------------------------------------------------------------------

def _make_flash_kernel(scale: float, compute_dtype):
    def kernel(q_ref, k_ref, v_ref, o_ref, m_sc, l_sc, acc_sc):
        ki = pl.program_id(1)

        @pl.when(ki == 0)
        def _():
            m_sc[...] = jnp.full_like(m_sc, -jnp.inf)
            l_sc[...] = jnp.zeros_like(l_sc)
            acc_sc[...] = jnp.zeros_like(acc_sc)

        # Batched over the head axis: (H, tq, hd) x (H, tk, hd) -> (H, tq, tk),
        # bf16 MXU inputs with f32 accumulation; 1/sqrt(hd) applied on the f32 scores.
        s = jnp.einsum("hqd,hkd->hqk", q_ref[...], k_ref[...],
                       preferred_element_type=jnp.float32) * scale

        m_prev = m_sc[...]
        m_new = jnp.maximum(m_prev, jnp.max(s, axis=-1, keepdims=True))
        alpha = jnp.exp(m_prev - m_new)
        # NOTE(v6e/v7x): if profiling shows the single EUP (exp) is the binding unit,
        # p = jnp.exp((s - m_new).astype(jnp.bfloat16)) roughly doubles EUP throughput;
        # kept f32 here (v5e has no bf16 EUP path and f32 is slightly more accurate).
        p = jnp.exp(s - m_new)
        l_sc[...] = alpha * l_sc[...] + jnp.sum(p, axis=-1, keepdims=True)
        acc_sc[...] = alpha * acc_sc[...] + jnp.einsum(
            "hqk,hkd->hqd", p.astype(compute_dtype), v_ref[...],
            preferred_element_type=jnp.float32)
        m_sc[...] = m_new

        @pl.when(ki == pl.num_programs(1) - 1)
        def _():
            inv_l = pl.reciprocal(l_sc[...], approx=True)     # EUP slot, ~free
            o_ref[...] = (acc_sc[...] * inv_l).astype(o_ref.dtype)

    return kernel


def _flash_attention(q, k, v, *, scale, compute_dtype, tq_pref=256, tk_pref=512):
    """q, k, v: (B, H, T, hd) head-major. Returns (B, H, T, hd) in compute_dtype."""
    B, H, T, hd = q.shape
    # No weights live in this kernel's VMEM, so a 512-row K/V tile is fine even on v7x
    # (64 MiB); sweep tq/tk per generation for production shapes.
    tq = _pick_row_tile(T, tq_pref)
    tk = _pick_row_tile(T, tk_pref)
    nq, nk = T // tq, T // tk

    buffer_bytes = 2 * (H * tq * hd * 2                  # q block (bf16)
                        + 2 * H * tk * hd * 2            # k + v blocks
                        + H * tq * hd * 2)               # output block
    buffer_bytes += (2 * H * tq + H * tq * hd) * 4       # m / l / acc scratch (f32)

    kernel = _make_flash_kernel(scale, compute_dtype)

    grid_spec = pltpu.PrefetchScalarGridSpec(
        num_scalar_prefetch=0,
        # (B, nq) flattened into one parallel axis so megacore sharding engages even at
        # small batch; the K/V sweep is the trailing "arbitrary" (reduction) axis.
        grid=(B * nq, nk),
        in_specs=[
            pl.BlockSpec((pl.Squeezed(), H, tq, hd),
                         lambda i, ki: (i // nq, 0, i % nq, 0)),
            pl.BlockSpec((pl.Squeezed(), H, tk, hd),
                         lambda i, ki: (i // nq, 0, ki, 0)),
            pl.BlockSpec((pl.Squeezed(), H, tk, hd),
                         lambda i, ki: (i // nq, 0, ki, 0)),
        ],
        out_specs=pl.BlockSpec((pl.Squeezed(), H, tq, hd),
                               lambda i, ki: (i // nq, 0, i % nq, 0)),
        scratch_shapes=[
            pltpu.VMEM((H, tq, 1), jnp.float32),         # m: running max
            pltpu.VMEM((H, tq, 1), jnp.float32),         # l: running denominator
            pltpu.VMEM((H, tq, hd), jnp.float32),        # acc: running numerator
        ],
    )
    return pl.pallas_call(
        kernel,
        out_shape=jax.ShapeDtypeStruct((B, H, T, hd), compute_dtype),
        grid_spec=grid_spec,
        compiler_params=pltpu.CompilerParams(
            dimension_semantics=("parallel", "arbitrary"),
            vmem_limit_bytes=_vmem_limit(buffer_bytes),
        ),
    )(q, k, v)


# ---------------------------------------------------------------------------
# Full SelfAttention forward
# ---------------------------------------------------------------------------

def self_attention(x, params, n_head, compute_dtype=jnp.bfloat16):
    """x: (B, T, C) float32; params follow nn.Linear convention W:(out, in), b:(out,)."""
    B, T, C = x.shape
    assert C % n_head == 0
    hd = C // n_head
    scale = 1.0 / math.sqrt(hd)

    # --- 1) fused QKV projection: runs ONCE over x (not once per query tile). ---
    w_qkv = jnp.concatenate(
        [params["wq"].T, params["wk"].T, params["wv"].T], axis=1).astype(compute_dtype)
    b_qkv = jnp.concatenate(
        [params["bq"], params["bk"], params["bv"]]).reshape(1, 3 * C).astype(jnp.float32)

    x2d = x.reshape(B * T, C).astype(compute_dtype)
    qkv = _linear(x2d, w_qkv, b_qkv, out_dtype=compute_dtype)            # (B*T, 3C)

    # Head-major layout for the flash kernel (pure relayout, no recompute).
    qkv = qkv.reshape(B, T, 3, n_head, hd).transpose(2, 0, 3, 1, 4)      # (3, B, H, T, hd)
    q, k, v = qkv[0], qkv[1], qkv[2]

    # --- 2) flash attention over a (B*nq, nk) grid, heads batched in one dot_general. ---
    y = _flash_attention(q, k, v, scale=scale, compute_dtype=compute_dtype)   # (B, H, T, hd)

    # --- 3) output projection on lane-dense (rows, C) tiles. ---
    y2d = y.transpose(0, 2, 1, 3).reshape(B * T, C)                      # merge heads
    w_p = params["wp"].T.astype(compute_dtype)
    b_p = params["bp"].reshape(1, C).astype(jnp.float32)
    out = _linear(y2d, w_p, b_p, out_dtype=x.dtype)                      # (B*T, C)
    return out.reshape(B, T, C)


# ---------------------------------------------------------------------------
# Reference / init / test
# ---------------------------------------------------------------------------

def reference_self_attention(x, params, n_head):
    """Plain-JAX f32 reference matching the PyTorch forward (dropout = identity)."""
    B, T, C = x.shape
    hd = C // n_head

    def lin(x, w, b):
        return x @ w.T + b

    q = lin(x, params["wq"], params["bq"]).reshape(B, T, n_head, hd).transpose(0, 2, 1, 3)
    k = lin(x, params["wk"], params["bk"]).reshape(B, T, n_head, hd).transpose(0, 2, 1, 3)
    v = lin(x, params["wv"], params["bv"]).reshape(B, T, n_head, hd).transpose(0, 2, 1, 3)
    att = jnp.einsum("bhqd,bhkd->bhqk", q, k) * (1.0 / math.sqrt(hd))
    att = jax.nn.softmax(att, axis=-1)
    y = jnp.einsum("bhqk,bhkd->bhqd", att, v)
    y = y.transpose(0, 2, 1, 3).reshape(B, T, C)
    return lin(y, params["wp"], params["bp"])


def init_params(key, n_embd):
    """Deterministic init mirroring nn.Linear default (uniform +/- 1/sqrt(fan_in))."""
    bound = 1.0 / math.sqrt(n_embd)
    keys = jax.random.split(key, 8)
    names = ["wq", "bq", "wk", "bk", "wv", "bv", "wp", "bp"]
    params = {}
    for i, name in enumerate(names):
        shape = (n_embd, n_embd) if name.startswith("w") else (n_embd,)
        params[name] = jax.random.uniform(
            keys[i], shape, dtype=jnp.float32, minval=-bound, maxval=bound)
    return params


if __name__ == "__main__":
    B, T, C = 2, 8, 32
    n_head = 4

    key = jax.random.PRNGKey(0)
    k_x, k_p = jax.random.split(key)
    x = jax.random.normal(k_x, (B, T, C), dtype=jnp.float32)
    params = init_params(k_p, C)

    out = self_attention(x, params, n_head)
    out = jax.block_until_ready(out)

    ref = reference_self_attention(x, params, n_head)
    assert out.shape == (B, T, C)
    # bf16 MXU inputs (f32 accumulation) + approx reciprocal -> loosened tolerance vs f32 ref.
    assert jnp.allclose(out, ref, atol=5e-2, rtol=5e-2), "mismatch vs reference"

    print("KERNEL_OK")
</pallas_src>

<mosaic_0001>
module attributes {stable_mosaic.version = 11 : i64} {
  func.func @_linear_kernel(%arg0: i32, %arg1: i32, %arg2: memref<16x32xbf16, #tpu.memory_space<vmem>>, %arg3: memref<32x96xbf16, #tpu.memory_space<vmem>>, %arg4: memref<1x96xf32, #tpu.memory_space<vmem>>, %arg5: memref<16x96xbf16, #tpu.memory_space<vmem>>) attributes {dimension_semantics = [#tpu.dimension_semantics<parallel>, #tpu.dimension_semantics<parallel>], iteration_bounds = array<i64: 1, 1>, scalar_prefetch = 0 : i64, scratch_operands = 0 : i64, tpu.core_type = #tpu.core_type<tc>, window_params = [{transform_indices = @transform_0, window_bounds = array<i64: 16, 32>}, {transform_indices = @transform_1, window_bounds = array<i64: 32, 96>}, {transform_indices = @transform_2, window_bounds = array<i64: 1, 96>}, {transform_indices = @transform_3, window_bounds = array<i64: 16, 96>}]} {
    %c0 = arith.constant 0 : index
    %c0_0 = arith.constant 0 : index
    %0 = vector.load %arg2[%c0, %c0_0] : memref<16x32xbf16, #tpu.memory_space<vmem>>, vector<16x32xbf16>
    %c0_1 = arith.constant 0 : index
    %c0_2 = arith.constant 0 : index
    %1 = vector.load %arg3[%c0_1, %c0_2] : memref<32x96xbf16, #tpu.memory_space<vmem>>, vector<32x96xbf16>
    %cst = arith.constant dense<0.000000e+00> : vector<16x96xf32>
    %2 = tpu.matmul %0, %1, %cst {dimension_numbers = #tpu.dot_dimension_numbers<[1], [0], [0], [1], [0, 0, 1, 1], [], []>} : vector<16x32xbf16>, vector<32x96xbf16>, vector<16x96xf32> -> vector<16x96xf32>
    %c0_3 = arith.constant 0 : index
    %c0_4 = arith.constant 0 : index
    %3 = vector.load %arg4[%c0_3, %c0_4] : memref<1x96xf32, #tpu.memory_space<vmem>>, vector<1x96xf32>
    %4 = vector.broadcast %3 : vector<1x96xf32> to vector<16x96xf32>
    %5 = arith.addf %2, %4 : vector<16x96xf32>
    %6 = arith.truncf %5 : vector<16x96xf32> to vector<16x96xbf16>
    %c0_5 = arith.constant 0 : index
    %c0_6 = arith.constant 0 : index
    %7 = vector.load %arg5[%c0_5, %c0_6] : memref<16x96xbf16, #tpu.memory_space<vmem>>, vector<16x96xbf16>
    tpu.vector_store %arg5[%c0_5, %c0_6], %6 {strides = array<i32>} : memref<16x96xbf16, #tpu.memory_space<vmem>>, vector<16x96xbf16>,
    return
  }
  func.func @transform_0(%arg0: i32, %arg1: i32) -> (i32, i32) {
    %c0_i32 = arith.constant 0 : i32
    %c0_i32_0 = arith.constant 0 : i32
    return %arg0, %c0_i32 : i32, i32
  }
  func.func @transform_1(%arg0: i32, %arg1: i32) -> (i32, i32) {
    %c0_i32 = arith.constant 0 : i32
    %c0_i32_0 = arith.constant 0 : i32
    return %c0_i32, %arg1 : i32, i32
  }
  func.func @transform_2(%arg0: i32, %arg1: i32) -> (i32, i32) {
    %c0_i32 = arith.constant 0 : i32
    %c0_i32_0 = arith.constant 0 : i32
    return %c0_i32, %arg1 : i32, i32
  }
  func.func @transform_3(%arg0: i32, %arg1: i32) -> (i32, i32) {
    %c0_i32 = arith.constant 0 : i32
    return %arg0, %arg1 : i32, i32
  }
}

</mosaic_0001>

<bundles_post_ra>
// kernel: tpu_custom_call.1
= control target key start
LH: loop header
LB: loop body
LE: loop exit
PB: predicated region body
PF: predicated region fallthrough
CT: control target
= control target key end

     0   :  { %8 = vsyncpa [#allocation3], 0  ;;  %s325_s0 = inlined_call_operand.hbm [shape: bf16[16,32], index: 0, kind: input, shape index: {}]   ;;  %s326_s1 = inlined_call_operand.hbm [shape: bf16[32,96], index: 1, kind: input, shape index: {}]   ;;  %s327_s2 = inlined_call_operand.vmem [shape: f32[1,96], index: 2, kind: input, shape index: {}]   ;;  %s328_s3 = inlined_call_operand.hbm [shape: bf16[16,96], index: 3, kind: output, shape index: {}]  }
   0x1   :  { %9 = vsyncpa [#allocation6], 0 }
   0x2   :  { %10 = vsyncpa [#allocation4], 0  ;;  %s250_s12 = smov [#allocation2]   ;;  %s178_s16 = scalar_lea.hbm %s325_s0, 128 }
   0x3   :  { %s16_s13 = sshll.u32 %s250_s12, 4  ;;  %p179_p0 = scmp.ne.s32.totalorder %s325_s0, %s178_s16  ;;  %s17_s13 = int_to_ptr.vmem [resolvable:$true] %s16_s13 }
   0x4   :  { %p182_p1 = scmp.lt.u32.totalorder %s178_s16, %s325_s0 }
   0x6   :  { %p184_p2 = pnand %p182_p1, %p179_p0 }
   0x8   :  { %187 = shalt.err (!%p184_p2)
}
   0x9   :  { %s188_s21 = scalar_lea.vmem %s17_s13, 128  ;;  %p193_p4 = scmp.lt.s32.totalorder %s17_s13, %s17_s13 }
   0xa   :  { %p189_p3 = scmp.ne.s32.totalorder %s17_s13, %s188_s21  ;;  %p194_p5 = scmp.lt.s32.totalorder %s188_s21, %s188_s21 }
   0xc   :  { %p195_p6 = por %p194_p5, %p193_p4 }
   0xe   :  { %p196_p7 = pnand %p195_p6, %p189_p3 }
  0x10   :  { %199 = shalt.err (!%p196_p7)
}
  0x11   :  { %s251_s22 = smov 64   ;;  %s252_s23 = smov 4  }
  0x12   :  { %22 = dma.hbm_to_vmem [thread:$0]  %s325_s0, 128, %s17_s13, [#allocation3], %s251_s22, %s251_s22, %s252_s23  }
  0x13   :  { %s253_s26 = smov [#allocation5]   ;;  %s200_s30 = scalar_lea.hbm %s326_s1, 256 }
  0x14   :  { %s28_s27 = sshll.u32 %s253_s26, 4  ;;  %p201_p8 = scmp.ne.s32.totalorder %s326_s1, %s200_s30  ;;  %s29_s27 = int_to_ptr.vmem [resolvable:$true] %s28_s27 }
  0x15   :  { %p204_p9 = scmp.lt.u32.totalorder %s200_s30, %s326_s1 }
  0x17   :  { %p206_p10 = pnand %p204_p9, %p201_p8 }
  0x19   :  { %209 = shalt.err (!%p206_p10)
}
  0x1a   :  { %s210_s8 = scalar_lea.vmem %s29_s27, 256  ;;  %p215_p12 = scmp.lt.s32.totalorder %s29_s27, %s29_s27 }
  0x1b   :  { %p211_p11 = scmp.ne.s32.totalorder %s29_s27, %s210_s8  ;;  %p216_p13 = scmp.lt.s32.totalorder %s210_s8, %s210_s8 }
  0x1d   :  { %p217_p0 = por %p216_p13, %p215_p12 }
  0x1f   :  { %p218_p1 = pnand %p217_p0, %p211_p11 }
  0x21   :  { %221 = shalt.err (!%p218_p1)
}
  0x22   :  { %34 = dma.hbm_to_vmem [thread:$0]  %s326_s1, 256, %s29_s27, [#allocation6], %s251_s22, %s251_s22, %s252_s23  }
  0x23   :  { %244 = dma.done.wait [#allocation3], 128  }
  0x24   :  { %245 = vsyncadd [#allocation3], 4294967168 }
  0x25   :  { %246 = dma.done.wait [#allocation6], 256  }
  0x26   :  { %247 = vsyncadd [#allocation6], 4294967040  ;;  %v254_v0 = vmov 0.0   ;;  %vm255_vm0 = vmmov 0   ;;  %v175_v1 = vld [vmem:[#allocation5] sm:$0xff]   ;;  %v176_v2 = vld [vmem:[#allocation5 + $0x8] sm:$0xff]  }
  0x27   :  { %160 = vmatprep.subr.bf16.mxu0 %v254_v0  ;;  %164 = vmatprep.mubr.msk.bf16.mxu0 %vm255_vm0, %v254_v0  ;;  %v177_v3 = vld [vmem:[#allocation2] sm:$0xff]   ;;  %vm74_vm1 = vcmask 261120   ;;  %vm127_vm2 = vcmask 781312   ;;  %s256_s1 = smov [#allocation7]  }
  0x28   :  { %161 = vmatpush3.bf16.msra.mxu0 %v175_v1  ;;  %v148_v4 = vld [vmem:[%s327_s2] ss:$0 sm:$0xff]  ;;  %s135_s12 = sshll.u32 %s256_s1, 4  ;;  %s136_s12 = int_to_ptr.vmem [resolvable:$true] %s135_s12 }
  0x29   :  { %162 = vmatprep.subr.bf16.mxu0 %v254_v0  ;;  %s222_s13 = scalar_lea.vmem %s136_s12, 128  ;;  %p227_p3 = scmp.lt.s32.totalorder %s136_s12, %s136_s12 }
  0x2a   :  { %p223_p2 = scmp.ne.s32.totalorder %s136_s12, %s222_s13  ;;  %p228_p4 = scmp.lt.s32.totalorder %s222_s13, %s222_s13 }
  0x2c   :  { %163 = vmatpush3.bf16.msra.mxu0 %v176_v2  ;;  %p229_p5 = por %p228_p4, %p227_p3 }
  0x2e   :  { %p230_p6 = pnand %p229_p5, %p223_p2 }
  0x2f   :  { %165 = vmatmul.mubr.msk.bf16.vlgmr.msra.gmra.mrb[0].mxu0 %vm74_vm1, %v177_v3 }
 0x102   :  { %v112_v5 = vpop.f32.mrb[0].mxu0 }
 0x103   :  { %v113_v6 = vadd.f32 %v148_v4, %v112_v5  ;;  %v166_v7 = vpop.f32.mrb[1].mxu0 }
 0x104   :  { %v115_v8 = vpop.f32.mrb[2].mxu0 }
 0x105   :  { %v155_v9 = vpack.c.bf16 %v113_v6, %v113_v6  ;;  %v116_v10 = vadd.f32 %v148_v4, %v115_v8  ;;  %v167_v11 = vpop.f32.mrb[3].mxu0 }
 0x107   :  { %v156_v12 = vpack.c.bf16 %v116_v10, %v116_v10  ;;  %128 = vst.msk [vmem:[#allocation7] sm:$0xf] %vm127_vm2, %v155_v9 }
 0x109   :  { %129 = vst.msk [vmem:[#allocation7 + $0x4] sm:$0xf] %vm127_vm2, %v156_v12 }
 0x10a   :  { %233 = shalt.err (!%p230_p6)
}
 0x10b   :  { %s234_s15 = scalar_lea.hbm %s328_s3, 128 }
 0x10c   :  { %p235_p7 = scmp.ne.s32.totalorder %s328_s3, %s234_s15  ;;  %p238_p8 = scmp.lt.u32.totalorder %s234_s15, %s328_s3 }
 0x10e   :  { %p240_p9 = pnand %p238_p8, %p235_p7 }
 0x110   :  { %243 = shalt.err (!%p240_p9)
}
 0x111   :  { %141 = dma.vmem_to_hbm [thread:$0]  %s136_s12, 128, %s328_s3, [#allocation4], %s251_s22, %s251_s22, %s252_s23  }
 0x112   :  { %248 = dma.done.wait [#allocation4], 128  }
 0x113   :  { %249 = vsyncadd [#allocation4], 4294967168 }
 0x114   :  { %145 = vsyncpa [#allocation3], 1 }
 0x115   :  { %146 = vsyncpa [#allocation6], 1 }
 0x116   :  { %147 = vsyncpa [#allocation4], 1 }

</bundles_post_ra>
